<compile_context>
chip_gen: v7x
topology: tpu7x:2x2x1
jax: 0.10.0
libtpu: 0.0.40
codegen_flags: <defaults>
</compile_context>

<pallas_src>
import functools

import jax
import jax.numpy as jnp
from jax.experimental import pallas as pl
from jax.experimental.pallas import tpu as pltpu


def _round_up(x, m):
    return ((x + m - 1) // m) * m


def _vae_encoder_kernel(x_ref, w1_ref, b1_ref, w2_ref, b2_ref, o_ref):
    # Hot path: 2 MXU matmuls (bf16 operands, f32 accumulation) + bias + ReLU, fused in VMEM.
    x = x_ref[...].astype(jnp.bfloat16)
    h = jnp.dot(x, w1_ref[...], preferred_element_type=jnp.float32) + b1_ref[...]
    h = jnp.maximum(h, 0.0)
    out = jnp.dot(h.astype(jnp.bfloat16), w2_ref[...],
                  preferred_element_type=jnp.float32) + b2_ref[...]
    o_ref[...] = out.astype(o_ref.dtype)


@functools.partial(jax.jit, static_argnames=())
def vae_encoder_forward(x, params):
    """x: [B, input_dim] float32 -> (mu, logvar), each [B, latent_dim] float32."""
    w1, b1, w_mu, b_mu, w_lv, b_lv = params
    B, D = x.shape
    H = w1.shape[1]        # 512
    L = w_mu.shape[1]      # latent_dim

    LANE, SUB = 128, 8
    D_pad = _round_up(max(D, LANE), LANE)          # full-width MXU contraction
    L_pad = _round_up(max(L, LANE), LANE)          # lane-dense output per head
    N_out = 2 * L_pad                              # [ mu_pad | logvar_pad ]

    # Batch tiling: one grid step for small batches; 128-row tiles otherwise.
    if B <= 128:
        block_m = _round_up(B, SUB)
        B_pad = block_m
    else:
        block_m = 128
        B_pad = _round_up(B, block_m)

    # Zero-pad inputs/weights (zeros in the padded K-dim / output columns are exact no-ops).
    x_p = jnp.zeros((B_pad, D_pad), jnp.float32).at[:B, :D].set(x)
    w1_p = jnp.zeros((D_pad, H), jnp.bfloat16).at[:D, :].set(w1.astype(jnp.bfloat16))
    b1_p = b1.reshape(1, H).astype(jnp.float32)

    # Fuse the two heads into one wide weight / bias.
    w2_p = jnp.zeros((H, N_out), jnp.bfloat16)
    w2_p = w2_p.at[:, :L].set(w_mu.astype(jnp.bfloat16))
    w2_p = w2_p.at[:, L_pad:L_pad + L].set(w_lv.astype(jnp.bfloat16))
    b2_p = jnp.zeros((1, N_out), jnp.float32)
    b2_p = b2_p.at[0, :L].set(b_mu.reshape(-1))
    b2_p = b2_p.at[0, L_pad:L_pad + L].set(b_lv.reshape(-1))

    grid = (B_pad // block_m,)

    out = pl.pallas_call(
        _vae_encoder_kernel,
        out_shape=jax.ShapeDtypeStruct((B_pad, N_out), jnp.float32),
        grid_spec=pltpu.PrefetchScalarGridSpec(
            num_scalar_prefetch=0,
            grid=grid,
            in_specs=[
                pl.BlockSpec((block_m, D_pad), lambda i: (i, 0)),   # x tile
                pl.BlockSpec((D_pad, H), lambda i: (0, 0)),         # w1 (constant block)
                pl.BlockSpec((1, H), lambda i: (0, 0)),             # b1
                pl.BlockSpec((H, N_out), lambda i: (0, 0)),         # fused [w_mu|w_logvar]
                pl.BlockSpec((1, N_out), lambda i: (0, 0)),         # fused bias
            ],
            out_specs=pl.BlockSpec((block_m, N_out), lambda i: (i, 0)),
        ),
        compiler_params=pltpu.CompilerParams(
            dimension_semantics=("parallel",),
        ),
    )(x_p, w1_p, b1_p, w2_p, b2_p)

    mu = out[:B, :L]
    logvar = out[:B, L_pad:L_pad + L]
    return mu, logvar


def init_params(key, input_dim, latent_dim):
    """Deterministic synthetic init. Weight layout: [in_features, out_features], f32."""
    k1, k2, k3 = jax.random.split(key, 3)
    w1 = jax.random.normal(k1, (input_dim, 512), jnp.float32) / jnp.sqrt(float(input_dim))
    b1 = jnp.zeros((512,), jnp.float32)
    w_mu = jax.random.normal(k2, (512, latent_dim), jnp.float32) / jnp.sqrt(512.0)
    b_mu = jnp.zeros((latent_dim,), jnp.float32)
    w_lv = jax.random.normal(k3, (512, latent_dim), jnp.float32) / jnp.sqrt(512.0)
    b_lv = jnp.zeros((latent_dim,), jnp.float32)
    return (w1, b1, w_mu, b_mu, w_lv, b_lv)


def reference_forward(x, params):
    """Pure-f32 JAX reference matching the PyTorch VAE_Encoder forward."""
    w1, b1, w_mu, b_mu, w_lv, b_lv = params
    h = jnp.maximum(x @ w1 + b1, 0.0)
    return h @ w_mu + b_mu, h @ w_lv + b_lv


if __name__ == "__main__":
    key = jax.random.PRNGKey(0)
    kx, kp = jax.random.split(key)

    batch, input_dim, latent_dim = 4, 32, 16
    x = jax.random.normal(kx, (batch, input_dim), jnp.float32)
    params = init_params(kp, input_dim, latent_dim)

    mu, logvar = vae_encoder_forward(x, params)
    mu = jax.block_until_ready(mu)
    logvar = jax.block_until_ready(logvar)

    mu_ref, logvar_ref = reference_forward(x, params)

    assert mu.shape == (batch, latent_dim)
    assert logvar.shape == (batch, latent_dim)
    # bf16 matmul operands with f32 accumulation -> loose tolerance vs. f32 reference.
    assert jnp.allclose(mu, mu_ref, atol=5e-2, rtol=5e-2), "mu mismatch vs reference"
    assert jnp.allclose(logvar, logvar_ref, atol=5e-2, rtol=5e-2), "logvar mismatch vs reference"

    print("KERNEL_OK")
</pallas_src>

<mosaic_0001>
module attributes {stable_mosaic.version = 11 : i64} {
  func.func @_vae_encoder_kernel(%arg0: i32, %arg1: memref<8x128xf32, #tpu.memory_space<vmem>>, %arg2: memref<128x512xbf16, #tpu.memory_space<vmem>>, %arg3: memref<1x512xf32, #tpu.memory_space<vmem>>, %arg4: memref<512x256xbf16, #tpu.memory_space<vmem>>, %arg5: memref<1x256xf32, #tpu.memory_space<vmem>>, %arg6: memref<8x256xf32, #tpu.memory_space<vmem>>) attributes {dimension_semantics = [#tpu.dimension_semantics<parallel>], iteration_bounds = array<i64: 1>, scalar_prefetch = 0 : i64, scratch_operands = 0 : i64, tpu.core_type = #tpu.core_type<tc>, window_params = [{transform_indices = @transform_0, window_bounds = array<i64: 8, 128>}, {pipeline_mode = #tpu.pipeline_mode<synchronous>, transform_indices = @transform_1, window_bounds = array<i64: 128, 512>}, {pipeline_mode = #tpu.pipeline_mode<synchronous>, transform_indices = @transform_2, window_bounds = array<i64: 1, 512>}, {pipeline_mode = #tpu.pipeline_mode<synchronous>, transform_indices = @transform_3, window_bounds = array<i64: 512, 256>}, {pipeline_mode = #tpu.pipeline_mode<synchronous>, transform_indices = @transform_4, window_bounds = array<i64: 1, 256>}, {transform_indices = @transform_5, window_bounds = array<i64: 8, 256>}]} {
    %c0 = arith.constant 0 : index
    %c0_0 = arith.constant 0 : index
    %0 = vector.load %arg1[%c0, %c0_0] : memref<8x128xf32, #tpu.memory_space<vmem>>, vector<8x128xf32>
    %1 = arith.truncf %0 : vector<8x128xf32> to vector<8x128xbf16>
    %c0_1 = arith.constant 0 : index
    %c0_2 = arith.constant 0 : index
    %2 = vector.load %arg2[%c0_1, %c0_2] : memref<128x512xbf16, #tpu.memory_space<vmem>>, vector<128x512xbf16>
    %cst = arith.constant dense<0.000000e+00> : vector<8x512xf32>
    %3 = tpu.matmul %1, %2, %cst {dimension_numbers = #tpu.dot_dimension_numbers<[1], [0], [0], [1], [0, 0, 1, 1], [], []>} : vector<8x128xbf16>, vector<128x512xbf16>, vector<8x512xf32> -> vector<8x512xf32>
    %c0_3 = arith.constant 0 : index
    %c0_4 = arith.constant 0 : index
    %4 = vector.load %arg3[%c0_3, %c0_4] : memref<1x512xf32, #tpu.memory_space<vmem>>, vector<1x512xf32>
    %5 = vector.broadcast %4 : vector<1x512xf32> to vector<8x512xf32>
    %6 = arith.addf %3, %5 : vector<8x512xf32>
    %cst_5 = arith.constant 0.000000e+00 : f32
    %7 = vector.broadcast %cst_5 : f32 to vector<8x512xf32>
    %8 = arith.maximumf %6, %7 : vector<8x512xf32>
    %9 = arith.truncf %8 : vector<8x512xf32> to vector<8x512xbf16>
    %c0_6 = arith.constant 0 : index
    %c0_7 = arith.constant 0 : index
    %10 = vector.load %arg4[%c0_6, %c0_7] : memref<512x256xbf16, #tpu.memory_space<vmem>>, vector<512x256xbf16>
    %cst_8 = arith.constant dense<0.000000e+00> : vector<8x256xf32>
    %11 = tpu.matmul %9, %10, %cst_8 {dimension_numbers = #tpu.dot_dimension_numbers<[1], [0], [0], [1], [0, 0, 1, 1], [], []>} : vector<8x512xbf16>, vector<512x256xbf16>, vector<8x256xf32> -> vector<8x256xf32>
    %c0_9 = arith.constant 0 : index
    %c0_10 = arith.constant 0 : index
    %12 = vector.load %arg5[%c0_9, %c0_10] : memref<1x256xf32, #tpu.memory_space<vmem>>, vector<1x256xf32>
    %13 = vector.broadcast %12 : vector<1x256xf32> to vector<8x256xf32>
    %14 = arith.addf %11, %13 : vector<8x256xf32>
    %c0_11 = arith.constant 0 : index
    %c0_12 = arith.constant 0 : index
    %15 = vector.load %arg6[%c0_11, %c0_12] : memref<8x256xf32, #tpu.memory_space<vmem>>, vector<8x256xf32>
    tpu.vector_store %arg6[%c0_11, %c0_12], %14 {strides = array<i32>} : memref<8x256xf32, #tpu.memory_space<vmem>>, vector<8x256xf32>,
    return
  }
  func.func @transform_0(%arg0: i32) -> (i32, i32) {
    %c0_i32 = arith.constant 0 : i32
    %c0_i32_0 = arith.constant 0 : i32
    return %arg0, %c0_i32 : i32, i32
  }
  func.func @transform_1(%arg0: i32) -> (i32, i32) {
    %c0_i32 = arith.constant 0 : i32
    %c0_i32_0 = arith.constant 0 : i32
    %c0_i32_1 = arith.constant 0 : i32
    return %c0_i32, %c0_i32_0 : i32, i32
  }
  func.func @transform_2(%arg0: i32) -> (i32, i32) {
    %c0_i32 = arith.constant 0 : i32
    %c0_i32_0 = arith.constant 0 : i32
    %c0_i32_1 = arith.constant 0 : i32
    return %c0_i32, %c0_i32_0 : i32, i32
  }
  func.func @transform_3(%arg0: i32) -> (i32, i32) {
    %c0_i32 = arith.constant 0 : i32
    %c0_i32_0 = arith.constant 0 : i32
    %c0_i32_1 = arith.constant 0 : i32
    return %c0_i32, %c0_i32_0 : i32, i32
  }
  func.func @transform_4(%arg0: i32) -> (i32, i32) {
    %c0_i32 = arith.constant 0 : i32
    %c0_i32_0 = arith.constant 0 : i32
    %c0_i32_1 = arith.constant 0 : i32
    return %c0_i32, %c0_i32_0 : i32, i32
  }
  func.func @transform_5(%arg0: i32) -> (i32, i32) {
    %c0_i32 = arith.constant 0 : i32
    %c0_i32_0 = arith.constant 0 : i32
    return %arg0, %c0_i32 : i32, i32
  }
}

</mosaic_0001>

<bundles_post_ra>
// kernel: vae_encoder_forward.1
= control target key start
LH: loop header
LB: loop body
LE: loop exit
PB: predicated region body
PF: predicated region fallthrough
CT: control target
= control target key end

     0   :  { %v1056_v1 = vmov 0   ;;  %s1390_s1 = inlined_call_operand.vmem [shape: bf16[128,512], index: 1, kind: input, shape index: {}]   ;;  %s1391_s3 = inlined_call_operand.vmem [shape: bf16[512,256], index: 3, kind: input, shape index: {}]   ;;  %s1392_s0 = inlined_call_operand.vmem [shape: f32[8,128], index: 0, kind: input, shape index: {}]   ;;  %s1393_s2 = inlined_call_operand.vmem [shape: f32[1,512], index: 2, kind: input, shape index: {}]   ;;  %s1394_s4 = inlined_call_operand.vmem [shape: f32[1,256], index: 4, kind: input, shape index: {}]   ;;  %s1395_s5 = inlined_call_operand.vmem [shape: f32[8,256], index: 5, kind: output, shape index: {}]  }
   0x1   :  { %v912_v0 = vld [vmem:[%s1390_s1 + $0x4] ss:$16 sps:$4 sm:$0xff]   ;;  %269 = vmatprep.mubr.bf16.mxu0 %v1056_v1  ;;  %310 = vmatprep.mubr.bf16.mxu1 %v1056_v1  ;;  %v914_v2 = vld [vmem:[%s1390_s1 + $0xc] ss:$16 sps:$4 sm:$0xff]   ;;  %v916_v3 = vld [vmem:[%s1390_s1] ss:$16 sps:$4 sm:$0xff]  }
   0x2   :  { %237 = vmatprep.subr.bf16.mxu0 %v912_v0  ;;  %v917_v4 = vld [vmem:[%s1390_s1 + $0x8] ss:$16 sps:$4 sm:$0xff]   ;;  %278 = vmatprep.subr.bf16.mxu1 %v914_v2  ;;  %v918_v5 = vld [vmem:[%s1390_s1 + $0x24] ss:$16 sps:$4 sm:$0xff]   ;;  %v920_v6 = vld [vmem:[%s1390_s1 + $0x2c] ss:$16 sps:$4 sm:$0xff]  }
   0x3   :  { %238 = vmatpush1.bf16.msra.mxu0 %v916_v3  ;;  %279 = vmatpush1.bf16.msra.mxu1 %v917_v4  ;;  %v922_v7 = vld [vmem:[%s1390_s1 + $0x20] ss:$16 sps:$4 sm:$0xff]   ;;  %v923_v8 = vld [vmem:[%s1390_s1 + $0x28] ss:$16 sps:$4 sm:$0xff]   ;;  %v924_v9 = vld [vmem:[%s1390_s1 + $0x44] ss:$16 sps:$4 sm:$0xff]  }
   0x4   :  { %239 = vmatprep.subr.bf16.mxu0 %v918_v5  ;;  %280 = vmatprep.subr.bf16.mxu1 %v920_v6  ;;  %v926_v10 = vld [vmem:[%s1390_s1 + $0x4c] ss:$16 sps:$4 sm:$0xff]   ;;  %v928_v11 = vld [vmem:[%s1390_s1 + $0x40] ss:$16 sps:$4 sm:$0xff]   ;;  %v929_v12 = vld [vmem:[%s1390_s1 + $0x48] ss:$16 sps:$4 sm:$0xff]  }
   0x5   :  { %v930_v13 = vld [vmem:[%s1390_s1 + $0x64] ss:$16 sps:$4 sm:$0xff]   ;;  %v932_v14 = vld [vmem:[%s1390_s1 + $0x6c] ss:$16 sps:$4 sm:$0xff]   ;;  %v934_v15 = vld [vmem:[%s1390_s1 + $0x60] ss:$16 sps:$4 sm:$0xff]  }
   0x6   :  { %v935_v16 = vld [vmem:[%s1390_s1 + $0x68] ss:$16 sps:$4 sm:$0xff]   ;;  %v936_v17 = vld [vmem:[%s1390_s1 + $0x84] ss:$16 sps:$4 sm:$0xff]   ;;  %v938_v18 = vld [vmem:[%s1390_s1 + $0x8c] ss:$16 sps:$4 sm:$0xff]  }
   0x7   :  { %240 = vmatpush1.bf16.msra.mxu0 %v922_v7  ;;  %281 = vmatpush1.bf16.msra.mxu1 %v923_v8  ;;  %v940_v19 = vld [vmem:[%s1390_s1 + $0x80] ss:$16 sps:$4 sm:$0xff]   ;;  %v941_v20 = vld [vmem:[%s1390_s1 + $0x88] ss:$16 sps:$4 sm:$0xff]   ;;  %v942_v21 = vld [vmem:[%s1390_s1 + $0xa4] ss:$16 sps:$4 sm:$0xff]  }
   0x8   :  { %241 = vmatprep.subr.bf16.mxu0 %v924_v9  ;;  %282 = vmatprep.subr.bf16.mxu1 %v926_v10  ;;  %v944_v22 = vld [vmem:[%s1390_s1 + $0xac] ss:$16 sps:$4 sm:$0xff]   ;;  %v946_v23 = vld [vmem:[%s1390_s1 + $0xa0] ss:$16 sps:$4 sm:$0xff]   ;;  %v947_v24 = vld [vmem:[%s1390_s1 + $0xa8] ss:$16 sps:$4 sm:$0xff]  }
   0x9   :  { %v948_v25 = vld [vmem:[%s1390_s1 + $0xc4] ss:$16 sps:$4 sm:$0xff]   ;;  %v950_v26 = vld [vmem:[%s1390_s1 + $0xcc] ss:$16 sps:$4 sm:$0xff]   ;;  %v952_v27 = vld [vmem:[%s1390_s1 + $0xc0] ss:$16 sps:$4 sm:$0xff]  }
   0xa   :  { %v953_v28 = vld [vmem:[%s1390_s1 + $0xc8] ss:$16 sps:$4 sm:$0xff]   ;;  %v954_v29 = vld [vmem:[%s1390_s1 + $0xe4] ss:$16 sps:$4 sm:$0xff]   ;;  %v956_v30 = vld [vmem:[%s1390_s1 + $0xec] ss:$16 sps:$4 sm:$0xff]  }
   0xb   :  { %242 = vmatpush1.bf16.msra.mxu0 %v928_v11  ;;  %283 = vmatpush1.bf16.msra.mxu1 %v929_v12  ;;  %v958_v31 = vld [vmem:[%s1390_s1 + $0xe0] ss:$16 sps:$4 sm:$0xff]   ;;  %v959_v32 = vld [vmem:[%s1390_s1 + $0xe8] ss:$16 sps:$4 sm:$0xff]   ;;  %v962_v34 = vld [vmem:[%s1391_s3 + $0x4] ss:$8 sps:$4 sm:$0xff]  }
   0xc   :  { %243 = vmatprep.subr.bf16.mxu0 %v930_v13  ;;  %284 = vmatprep.subr.bf16.mxu1 %v932_v14  ;;  %v21_v33 = vld [vmem:[%s1392_s0] sm:$0xff]  ;;  %v968_v39 = vld [vmem:[%s1391_s3 + $0x14] ss:$8 sps:$4 sm:$0xff]   ;;  %v966_v41 = vld [vmem:[%s1391_s3 + $0x10] ss:$8 sps:$4 sm:$0xff]  }
   0xd   :  { %v965_v35 = vld [vmem:[%s1391_s3 + $0x104] ss:$8 sps:$4 sm:$0xff]   ;;  %v22_v36 = vpack.c.bf16 %v21_v33, %v21_v33  ;;  %v960_v37 = vld [vmem:[%s1391_s3] ss:$8 sps:$4 sm:$0xff]   ;;  %v971_v40 = vld [vmem:[%s1391_s3 + $0x114] ss:$8 sps:$4 sm:$0xff]  }
   0xe   :  { %v963_v38 = vld [vmem:[%s1391_s3 + $0x100] ss:$8 sps:$4 sm:$0xff]   ;;  %v969_v42 = vld [vmem:[%s1391_s3 + $0x110] ss:$8 sps:$4 sm:$0xff]   ;;  %v974_v43 = vld [vmem:[%s1391_s3 + $0x24] ss:$8 sps:$4 sm:$0xff]  }
   0xf   :  { %244 = vmatpush1.bf16.msra.mxu0 %v934_v15  ;;  %285 = vmatpush1.bf16.msra.mxu1 %v935_v16  ;;  %v977_v44 = vld [vmem:[%s1391_s3 + $0x124] ss:$8 sps:$4 sm:$0xff]   ;;  %v972_v45 = vld [vmem:[%s1391_s3 + $0x20] ss:$8 sps:$4 sm:$0xff]   ;;  %v980_v47 = vld [vmem:[%s1391_s3 + $0x34] ss:$8 sps:$4 sm:$0xff]  }
  0x10   :  { %245 = vmatprep.subr.bf16.mxu0 %v936_v17  ;;  %286 = vmatprep.subr.bf16.mxu1 %v938_v18  ;;  %v975_v46 = vld [vmem:[%s1391_s3 + $0x120] ss:$8 sps:$4 sm:$0xff]   ;;  %v983_v48 = vld [vmem:[%s1391_s3 + $0x134] ss:$8 sps:$4 sm:$0xff]   ;;  %v978_v49 = vld [vmem:[%s1391_s3 + $0x30] ss:$8 sps:$4 sm:$0xff]  }
  0x11   :  { %v981_v50 = vld [vmem:[%s1391_s3 + $0x130] ss:$8 sps:$4 sm:$0xff]   ;;  %v986_v51 = vld [vmem:[%s1391_s3 + $0x44] ss:$8 sps:$4 sm:$0xff]   ;;  %v984_v53 = vld [vmem:[%s1391_s3 + $0x40] ss:$8 sps:$4 sm:$0xff]  }
  0x12   :  { %v989_v52 = vld [vmem:[%s1391_s3 + $0x144] ss:$8 sps:$4 sm:$0xff]   ;;  %v987_v54 = vld [vmem:[%s1391_s3 + $0x140] ss:$8 sps:$4 sm:$0xff]   ;;  %v992_v55 = vld [vmem:[%s1391_s3 + $0x54] ss:$8 sps:$4 sm:$0xff]  }
  0x13   :  { %246 = vmatpush1.bf16.msra.mxu0 %v940_v19  ;;  %287 = vmatpush1.bf16.msra.mxu1 %v941_v20  ;;  %v995_v56 = vld [vmem:[%s1391_s3 + $0x154] ss:$8 sps:$4 sm:$0xff]   ;;  %v990_v57 = vld [vmem:[%s1391_s3 + $0x50] ss:$8 sps:$4 sm:$0xff]   ;;  %v998_v59 = vld [vmem:[%s1391_s3 + $0x64] ss:$8 sps:$4 sm:$0xff]  }
  0x14   :  { %247 = vmatprep.subr.bf16.mxu0 %v942_v21  ;;  %288 = vmatprep.subr.bf16.mxu1 %v944_v22  ;;  %v993_v58 = vld [vmem:[%s1391_s3 + $0x150] ss:$8 sps:$4 sm:$0xff]   ;;  %v1001_v60 = vld [vmem:[%s1391_s3 + $0x164] ss:$8 sps:$4 sm:$0xff]   ;;  %v996_v61 = vld [vmem:[%s1391_s3 + $0x60] ss:$8 sps:$4 sm:$0xff]  }
  0x15   :  { %v999_v62 = vld [vmem:[%s1391_s3 + $0x160] ss:$8 sps:$4 sm:$0xff]   ;;  %v1004_v63 = vld [vmem:[%s1391_s3 + $0x74] ss:$8 sps:$4 sm:$0xff]   ;;  %v1002_v1 = vld [vmem:[%s1391_s3 + $0x70] ss:$8 sps:$4 sm:$0xff]  }
  0x16   :  { %v1007_v0 = vld [vmem:[%s1391_s3 + $0x174] ss:$8 sps:$4 sm:$0xff]   ;;  %v1005_v2 = vld [vmem:[%s1391_s3 + $0x170] ss:$8 sps:$4 sm:$0xff]   ;;  %v1010_v3 = vld [vmem:[%s1391_s3 + $0x84] ss:$8 sps:$4 sm:$0xff]  }
  0x17   :  { %248 = vmatpush1.bf16.msra.mxu0 %v946_v23  ;;  %289 = vmatpush1.bf16.msra.mxu1 %v947_v24  ;;  %v1013_v4 = vld [vmem:[%s1391_s3 + $0x184] ss:$8 sps:$4 sm:$0xff]   ;;  %v1008_v5 = vld [vmem:[%s1391_s3 + $0x80] ss:$8 sps:$4 sm:$0xff]   ;;  %v1016_v7 = vld [vmem:[%s1391_s3 + $0x94] ss:$8 sps:$4 sm:$0xff]  }
  0x18   :  { %249 = vmatprep.subr.bf16.mxu0 %v948_v25  ;;  %290 = vmatprep.subr.bf16.mxu1 %v950_v26  ;;  %v1011_v6 = vld [vmem:[%s1391_s3 + $0x180] ss:$8 sps:$4 sm:$0xff]   ;;  %v1019_v8 = vld [vmem:[%s1391_s3 + $0x194] ss:$8 sps:$4 sm:$0xff]   ;;  %v1014_v9 = vld [vmem:[%s1391_s3 + $0x90] ss:$8 sps:$4 sm:$0xff]  }
  0x19   :  { %v1017_v10 = vld [vmem:[%s1391_s3 + $0x190] ss:$8 sps:$4 sm:$0xff]   ;;  %v1022_v11 = vld [vmem:[%s1391_s3 + $0xa4] ss:$8 sps:$4 sm:$0xff]   ;;  %v1020_v13 = vld [vmem:[%s1391_s3 + $0xa0] ss:$8 sps:$4 sm:$0xff]  }
  0x1a   :  { %v1025_v12 = vld [vmem:[%s1391_s3 + $0x1a4] ss:$8 sps:$4 sm:$0xff]   ;;  %v1023_v14 = vld [vmem:[%s1391_s3 + $0x1a0] ss:$8 sps:$4 sm:$0xff]   ;;  %v1028_v15 = vld [vmem:[%s1391_s3 + $0xb4] ss:$8 sps:$4 sm:$0xff]  }
  0x1b   :  { %250 = vmatpush1.bf16.msra.mxu0 %v952_v27  ;;  %291 = vmatpush1.bf16.msra.mxu1 %v953_v28  ;;  %v1031_v16 = vld [vmem:[%s1391_s3 + $0x1b4] ss:$8 sps:$4 sm:$0xff]   ;;  %v1026_v17 = vld [vmem:[%s1391_s3 + $0xb0] ss:$8 sps:$4 sm:$0xff]   ;;  %v1034_v19 = vld [vmem:[%s1391_s3 + $0xc4] ss:$8 sps:$4 sm:$0xff]  }
  0x1c   :  { %251 = vmatprep.subr.bf16.mxu0 %v954_v29  ;;  %292 = vmatprep.subr.bf16.mxu1 %v956_v30  ;;  %v1029_v18 = vld [vmem:[%s1391_s3 + $0x1b0] ss:$8 sps:$4 sm:$0xff]   ;;  %v1037_v20 = vld [vmem:[%s1391_s3 + $0x1c4] ss:$8 sps:$4 sm:$0xff]   ;;  %v1032_v21 = vld [vmem:[%s1391_s3 + $0xc0] ss:$8 sps:$4 sm:$0xff]  }
  0x1d   :  { %v1035_v22 = vld [vmem:[%s1391_s3 + $0x1c0] ss:$8 sps:$4 sm:$0xff]   ;;  %v1040_v23 = vld [vmem:[%s1391_s3 + $0xd4] ss:$8 sps:$4 sm:$0xff]   ;;  %v1038_v25 = vld [vmem:[%s1391_s3 + $0xd0] ss:$8 sps:$4 sm:$0xff]  }
  0x1e   :  { %v1043_v24 = vld [vmem:[%s1391_s3 + $0x1d4] ss:$8 sps:$4 sm:$0xff]   ;;  %v1041_v26 = vld [vmem:[%s1391_s3 + $0x1d0] ss:$8 sps:$4 sm:$0xff]   ;;  %v1046_v27 = vld [vmem:[%s1391_s3 + $0xe4] ss:$8 sps:$4 sm:$0xff]  }
  0x1f   :  { %252 = vmatpush1.bf16.msra.mxu0 %v958_v31  ;;  %293 = vmatpush1.bf16.msra.mxu1 %v959_v32  ;;  %v1049_v28 = vld [vmem:[%s1391_s3 + $0x1e4] ss:$8 sps:$4 sm:$0xff]   ;;  %v1044_v29 = vld [vmem:[%s1391_s3 + $0xe0] ss:$8 sps:$4 sm:$0xff]   ;;  %v1052_v31 = vld [vmem:[%s1391_s3 + $0xf4] ss:$8 sps:$4 sm:$0xff]  }
  0x20   :  { %723 = vmatprep.subr.bf16.mxu1 %v962_v34  ;;  %764 = vmatprep.subr.bf16.mxu0 %v965_v35  ;;  %v1047_v30 = vld [vmem:[%s1391_s3 + $0x1e0] ss:$8 sps:$4 sm:$0xff]   ;;  %v1055_v32 = vld [vmem:[%s1391_s3 + $0x1f4] ss:$8 sps:$4 sm:$0xff]   ;;  %v1050_v33 = vld [vmem:[%s1391_s3 + $0xf0] ss:$8 sps:$4 sm:$0xff]   ;;  %v57_v35 = vlaneseq }
  0x21   :  { %v1053_v34 = vld [vmem:[%s1391_s3 + $0x1f0] ss:$8 sps:$4 sm:$0xff]  }
  0x22   :  { %270 = vmatmul.mubr.bf16.vlgmr.msra.gmra.mrb[0].mxu0 %v22_v36  ;;  %311 = vmatmul.mubr.bf16.vlgmr.msra.gmra.mrb[0].mxu1 %v22_v36  ;;  %v58_v36 = vshrl.u32 %v57_v35, 7 }
  0x23   :  { %724 = vmatpush1.bf16.msra.mxu1 %v960_v37  ;;  %765 = vmatpush1.bf16.msra.mxu0 %v963_v38 }
  0x24   :  { %725 = vmatprep.subr.bf16.mxu1 %v968_v39  ;;  %766 = vmatprep.subr.bf16.mxu0 %v971_v40  ;;  %v59_v37 = vsub.s32 0, %v58_v36  ;;  %v67_v38 = vsub.s32 2, %v58_v36  ;;  %v55_v39 = vld [vmem:[%s1393_s2] sm:$0xf]  ;;  %v63_v40 = vsub.s32 1, %v58_v36 }
  0x27   :  { %726 = vmatpush1.bf16.msra.mxu1 %v966_v41  ;;  %767 = vmatpush1.bf16.msra.mxu0 %v969_v42  ;;  %v71_v41 = vsub.s32 3, %v58_v36  ;;  %v60_v42 = vrot.slane %v55_v39, %v59_v37 }
  0x28   :  { %727 = vmatprep.subr.bf16.mxu1 %v974_v43  ;;  %768 = vmatprep.subr.bf16.mxu0 %v977_v44  ;;  %v68_v43 = vrot.slane %v55_v39, %v67_v38  ;;  %v64_v44 = vrot.slane %v55_v39, %v63_v40 }
  0x2b   :  { %728 = vmatpush1.bf16.msra.mxu1 %v972_v45  ;;  %769 = vmatpush1.bf16.msra.mxu0 %v975_v46  ;;  %v72_v45 = vrot.slane %v55_v39, %v71_v41 }
  0x2c   :  { %729 = vmatprep.subr.bf16.mxu1 %v980_v47  ;;  %770 = vmatprep.subr.bf16.mxu0 %v983_v48 }
  0x2f   :  { %730 = vmatpush1.bf16.msra.mxu1 %v978_v49  ;;  %771 = vmatpush1.bf16.msra.mxu0 %v981_v50 }
  0x30   :  { %731 = vmatprep.subr.bf16.mxu1 %v986_v51  ;;  %772 = vmatprep.subr.bf16.mxu0 %v989_v52 }
  0x33   :  { %732 = vmatpush1.bf16.msra.mxu1 %v984_v53  ;;  %773 = vmatpush1.bf16.msra.mxu0 %v987_v54 }
  0x34   :  { %733 = vmatprep.subr.bf16.mxu1 %v992_v55  ;;  %774 = vmatprep.subr.bf16.mxu0 %v995_v56 }
  0x37   :  { %734 = vmatpush1.bf16.msra.mxu1 %v990_v57  ;;  %775 = vmatpush1.bf16.msra.mxu0 %v993_v58 }
  0x38   :  { %735 = vmatprep.subr.bf16.mxu1 %v998_v59  ;;  %776 = vmatprep.subr.bf16.mxu0 %v1001_v60 }
  0x3b   :  { %736 = vmatpush1.bf16.msra.mxu1 %v996_v61  ;;  %777 = vmatpush1.bf16.msra.mxu0 %v999_v62 }
  0x3c   :  { %737 = vmatprep.subr.bf16.mxu1 %v1004_v63  ;;  %778 = vmatprep.subr.bf16.mxu0 %v1007_v0 }
  0x3f   :  { %738 = vmatpush1.bf16.msra.mxu1 %v1002_v1  ;;  %779 = vmatpush1.bf16.msra.mxu0 %v1005_v2  ;;  %v391_v2 = vld [vmem:[%s1394_s4] sm:$0x3] }
  0x40   :  { %739 = vmatprep.subr.bf16.mxu1 %v1010_v3  ;;  %780 = vmatprep.subr.bf16.mxu0 %v1013_v4  ;;  %v396_v3 = vrot.slane %v391_v2, %v59_v37  ;;  %v400_v4 = vrot.slane %v391_v2, %v63_v40 }
  0x43   :  { %740 = vmatpush1.bf16.msra.mxu1 %v1008_v5  ;;  %781 = vmatpush1.bf16.msra.mxu0 %v1011_v6 }
  0x44   :  { %741 = vmatprep.subr.bf16.mxu1 %v1016_v7  ;;  %782 = vmatprep.subr.bf16.mxu0 %v1019_v8 }
  0x47   :  { %742 = vmatpush1.bf16.msra.mxu1 %v1014_v9  ;;  %783 = vmatpush1.bf16.msra.mxu0 %v1017_v10 }
  0x48   :  { %743 = vmatprep.subr.bf16.mxu1 %v1022_v11  ;;  %784 = vmatprep.subr.bf16.mxu0 %v1025_v12 }
  0x4b   :  { %744 = vmatpush1.bf16.msra.mxu1 %v1020_v13  ;;  %785 = vmatpush1.bf16.msra.mxu0 %v1023_v14 }
  0x4c   :  { %745 = vmatprep.subr.bf16.mxu1 %v1028_v15  ;;  %786 = vmatprep.subr.bf16.mxu0 %v1031_v16 }
  0x4f   :  { %746 = vmatpush1.bf16.msra.mxu1 %v1026_v17  ;;  %787 = vmatpush1.bf16.msra.mxu0 %v1029_v18 }
  0x50   :  { %747 = vmatprep.subr.bf16.mxu1 %v1034_v19  ;;  %788 = vmatprep.subr.bf16.mxu0 %v1037_v20 }
  0x53   :  { %748 = vmatpush1.bf16.msra.mxu1 %v1032_v21  ;;  %789 = vmatpush1.bf16.msra.mxu0 %v1035_v22 }
  0x54   :  { %749 = vmatprep.subr.bf16.mxu1 %v1040_v23  ;;  %790 = vmatprep.subr.bf16.mxu0 %v1043_v24 }
  0x57   :  { %750 = vmatpush1.bf16.msra.mxu1 %v1038_v25  ;;  %791 = vmatpush1.bf16.msra.mxu0 %v1041_v26 }
  0x58   :  { %751 = vmatprep.subr.bf16.mxu1 %v1046_v27  ;;  %792 = vmatprep.subr.bf16.mxu0 %v1049_v28 }
  0x5b   :  { %752 = vmatpush1.bf16.msra.mxu1 %v1044_v29  ;;  %793 = vmatpush1.bf16.msra.mxu0 %v1047_v30 }
  0x5c   :  { %753 = vmatprep.subr.bf16.mxu1 %v1052_v31  ;;  %794 = vmatprep.subr.bf16.mxu0 %v1055_v32 }
  0x5f   :  { %754 = vmatpush1.bf16.msra.mxu1 %v1050_v33  ;;  %795 = vmatpush1.bf16.msra.mxu0 %v1053_v34 }
  0xf5   :  { %v271_v46 = vpop.f32.mrb[0].mxu0  ;;  %v312_v47 = vpop.f32.mrb[0].mxu1 }
  0xf6   :  { %v272_v48 = vadd.f32 %v271_v46, %v60_v42  ;;  %v313_v49 = vadd.f32 %v312_v47, %v68_v43  ;;  %v273_v50 = vpop.f32.mrb[1].mxu0  ;;  %v314_v51 = vpop.f32.mrb[1].mxu1 }
  0xf7   :  { %v274_v52 = vadd.f32 %v273_v50, %v64_v44  ;;  %v315_v53 = vadd.f32 %v314_v51, %v72_v45  ;;  %v275_v54 = vpop.f32.mrb[2].mxu0  ;;  %v316_v55 = vpop.f32.mrb[2].mxu1 }
  0xf8   :  { %v319_v56 = vmax.f32 %v272_v48, 0.0  ;;  %v321_v57 = vmax.f32 %v313_v49, 0.0  ;;  %v276_v58 = vpop.f32.mrb[3].mxu0  ;;  %v317_v59 = vpop.f32.mrb[3].mxu1 }
  0xf9   :  { %v320_v60 = vmax.f32 %v274_v52, 0.0  ;;  %v322_v61 = vmax.f32 %v315_v53, 0.0 }
  0xfa   :  { %v325_v62 = vpack.c.bf16 %v321_v57, %v321_v57  ;;  %v323_v1 = vpack.c.bf16 %v319_v56, %v319_v56 }
  0xfb   :  { %v324_v63 = vpack.c.bf16 %v320_v60, %v320_v60  ;;  %v326_v0 = vpack.c.bf16 %v322_v61, %v322_v61 }
  0xfd   :  { %755 = vmatprep.mubr.bf16.mxu1 %v324_v63  ;;  %796 = vmatprep.mubr.bf16.mxu0 %v326_v0 }
  0xfe   :  { %756 = vmatmul.mubr.bf16.vlgmr.msra.gmra.mrb[4].mxu1 %v323_v1  ;;  %797 = vmatmul.mubr.bf16.vlgmr.msra.gmra.mrb[4].mxu0 %v325_v62 }
 0x1d1   :  { %v757_v5 = vpop.f32.mrb[4].mxu1  ;;  %v798_v6 = vpop.f32.mrb[4].mxu0 }
 0x1d2   :  { %v758_v7 = vadd.f32 %v757_v5, %v396_v3  ;;  %v759_v8 = vpop.f32.mrb[5].mxu1  ;;  %v800_v9 = vpop.f32.mrb[5].mxu0 }
 0x1d3   :  { %v760_v10 = vadd.f32 %v759_v8, %v400_v4  ;;  %v761_v11 = vpop.f32.mrb[6].mxu1  ;;  %v802_v12 = vpop.f32.mrb[6].mxu0 }
 0x1d4   :  { %v799_v13 = vadd.f32 %v798_v6, %v758_v7  ;;  %v762_v14 = vpop.f32.mrb[7].mxu1  ;;  %v803_v15 = vpop.f32.mrb[7].mxu0 }
 0x1d5   :  { %v801_v16 = vadd.f32 %v800_v9, %v760_v10 }
 0x1d6   :  { %805 = vst [vmem:[%s1395_s5] sm:$0xff] %v799_v13 }
 0x1d7   :  { %806 = vst [vmem:[%s1395_s5 + $0x8] sm:$0xff] %v801_v16 }

</bundles_post_ra>
